<compile_context>
chip_gen: v7x
topology: tpu7x:2x2x1
jax: 0.10.0
libtpu: 0.0.40
codegen_flags: <defaults>
</compile_context>

<pallas_src>
import functools

import jax
import jax.numpy as jnp
from jax import lax
from jax.experimental import pallas as pl
from jax.experimental.pallas import tpu as pltpu

K = 3  # kernel_size


def _block_kernel(x_ref, w1_ref, b1_ref, w2_ref, b2_ref, o_ref, p1_ref, p2_ref,
                  *, H, W, Bn):
    # x_ref : (Bn, Cin, H*W)          flat spatial on lanes
    # w1_ref: (Cmid, K*K*Cin)         columns flattened as (kh, kw, cin)
    # b1_ref: (Cmid, 1)
    # w2_ref: (Cout, K*K*Cmid)        columns flattened as (kh, kw, cmid)
    # b2_ref: (Cout, 1)
    # o_ref : (1, Cout, Bn*L2)        lane-dense output slab (wrapped columns incl.)
    # p1_ref: VMEM (K*K*Cin, Bn*L1)   im2col scratch for conv1 (contraction-major)
    # p2_ref: VMEM (K*K*Cmid, Bn*L2)  im2col scratch for conv2
    cin = x_ref.shape[1]
    cmid = w1_ref.shape[0]
    h1, w1 = H - (K - 1), W - (K - 1)
    h2, w2 = h1 - (K - 1), w1 - (K - 1)
    L1 = (h1 - 1) * W + w1          # wrap-around im2col column count per image
    L2 = (h2 - 1) * W + w2

    # ---- conv1: im2col as contiguous flat slices + ONE MXU matmul ----
    for b in range(Bn):
        for kh in range(K):
            for kw in range(K):
                r = (kh * K + kw) * cin
                s = kh * W + kw
                # (Cin, L1) strip: lane-dense store, sublane-masked only.
                p1_ref[r:r + cin, b * L1:(b + 1) * L1] = x_ref[b, :, s:s + L1]

    acc1 = jnp.dot(w1_ref[...], p1_ref[...], preferred_element_type=jnp.float32)
    hid = jnp.maximum(acc1 + b1_ref[...].astype(jnp.float32), 0.0)   # (Cmid, Bn*L1) f32
    # bf16-ready: matches a bf16 PyTorch module; no-op for the f32 test path.
    hid = hid.astype(o_ref.dtype)

    # ---- conv2: same trick on the (stride-W laid out) hidden activations ----
    for b in range(Bn):
        for kh in range(K):
            for kw in range(K):
                r = (kh * K + kw) * cmid
                s = b * L1 + kh * W + kw
                p2_ref[r:r + cmid, b * L2:(b + 1) * L2] = hid[:, s:s + L2]

    acc2 = jnp.dot(w2_ref[...], p2_ref[...], preferred_element_type=jnp.float32)
    acc2 = acc2 + b2_ref[...].astype(jnp.float32)                    # (Cout, 1) broadcast
    o_ref[0] = acc2.astype(o_ref.dtype)                              # single dense store


def _pick_bn(n, cin, cmid, cout, h, w, itemsize):
    """Images per grid step: amortize per-step overhead, keep >=2 grid steps when
    possible (v7x has 2 TensorCores), stay far inside the smallest VMEM budget."""
    h1, w1 = h - (K - 1), w - (K - 1)
    h2, w2 = h1 - (K - 1), w1 - (K - 1)
    l1 = (h1 - 1) * w + w1
    l2 = (h2 - 1) * w + w2
    per_img = itemsize * (K * K * cin * l1 + K * K * cmid * l2        # im2col scratch
                          + 2 * (cin * h * w + cout * l2))            # dbl-buffered x/out
    budget = 8 * 1024 * 1024   # conservative vs 64 MiB (v7x) / 16 MiB scoped (v5e)
    cap = max(1, min(n // 2 if n >= 2 else 1, budget // max(per_img, 1)))
    bn = 1
    for d in range(1, n + 1):
        if n % d == 0 and d <= cap:
            bn = d
    return bn


def block_forward(x_nchw, w1, b1, w2, b2, *, bn=None):
    """x_nchw: (N, Cin, H, W); w*: PyTorch Conv2d layout (Cout, Cin, K, K); b*: (Cout,)."""
    n, cin, h, w = x_nchw.shape
    cmid = w1.shape[0]
    cout = w2.shape[0]
    assert h >= 2 * (K - 1) + 1 and w >= 2 * (K - 1) + 1, "spatial dims too small"
    h1, w1_ = h - (K - 1), w - (K - 1)
    h2, w2_ = h1 - (K - 1), w1_ - (K - 1)
    l1 = (h1 - 1) * w + w1_
    l2 = (h2 - 1) * w + w2_
    dtype = x_nchw.dtype

    if bn is None:
        bn = _pick_bn(n, cin, cmid, cout, h, w, jnp.dtype(dtype).itemsize)
    assert n % bn == 0, (n, bn)
    g = n // bn

    # wrapper-side glue: layout conversion only (no compute hoisted out of the kernel)
    x_flat = x_nchw.reshape(n, cin, h * w)                              # flat spatial last
    w1f = jnp.transpose(w1, (0, 2, 3, 1)).reshape(cmid, K * K * cin).astype(dtype)
    w2f = jnp.transpose(w2, (0, 2, 3, 1)).reshape(cout, K * K * cmid).astype(dtype)
    b1f = b1.reshape(cmid, 1)
    b2f = b2.reshape(cout, 1)

    kernel = functools.partial(_block_kernel, H=h, W=w, Bn=bn)

    out_flat = pl.pallas_call(
        kernel,
        out_shape=jax.ShapeDtypeStruct((g, cout, bn * l2), dtype),
        grid_spec=pltpu.PrefetchScalarGridSpec(
            num_scalar_prefetch=0,
            grid=(g,),
            in_specs=[
                pl.BlockSpec((bn, cin, h * w), lambda i: (i, 0, 0)),
                pl.BlockSpec((cmid, K * K * cin), lambda i: (0, 0)),    # weights resident
                pl.BlockSpec((cmid, 1), lambda i: (0, 0)),
                pl.BlockSpec((cout, K * K * cmid), lambda i: (0, 0)),
                pl.BlockSpec((cout, 1), lambda i: (0, 0)),
            ],
            out_specs=pl.BlockSpec((1, cout, bn * l2), lambda i: (i, 0, 0)),
            scratch_shapes=[
                pltpu.VMEM((K * K * cin, bn * l1), dtype),
                pltpu.VMEM((K * K * cmid, bn * l2), dtype),
            ],
        ),
        compiler_params=pltpu.CompilerParams(
            dimension_semantics=("parallel",)),
    )(x_flat, w1f, b1f, w2f, b2f)

    # unpack: split batch, pad each per-image row-slab to (h2, W), drop the K-1
    # wrapped garbage columns, restore NCHW.  Reshape/pad/transpose only (XLA-side).
    out = out_flat.reshape(g, cout, bn, l2)
    out = jnp.pad(out, ((0, 0), (0, 0), (0, 0), (0, h2 * w - l2)))
    out = out.reshape(g, cout, bn, h2, w)[..., :w2_]
    out = jnp.transpose(out, (0, 2, 1, 3, 4)).reshape(n, cout, h2, w2_)
    return out


def _reference(x, w1, b1, w2, b2):
    # pure-JAX reference (NCHW, valid padding) for correctness check
    dn = ('NCHW', 'OIHW', 'NCHW')
    y = lax.conv_general_dilated(x, w1, (1, 1), 'VALID', dimension_numbers=dn)
    y = y + b1.reshape(1, -1, 1, 1)
    y = jnp.maximum(y, 0.0)
    y = lax.conv_general_dilated(y, w2, (1, 1), 'VALID', dimension_numbers=dn)
    y = y + b2.reshape(1, -1, 1, 1)
    return y


if __name__ == "__main__":
    key = jax.random.PRNGKey(0)
    k_x, k_w1, k_b1, k_w2, k_b2 = jax.random.split(key, 5)

    N, Cin, Cout, H, W = 2, 4, 8, 16, 16

    x = jax.random.normal(k_x, (N, Cin, H, W), jnp.float32)
    # deterministic synthetic parameters (PyTorch Conv2d weight layout: O, I, kH, kW)
    w1 = jax.random.normal(k_w1, (Cout, Cin, K, K), jnp.float32) * 0.1
    b1 = jax.random.normal(k_b1, (Cout,), jnp.float32) * 0.1
    w2 = jax.random.normal(k_w2, (Cout, Cout, K, K), jnp.float32) * 0.1
    b2 = jax.random.normal(k_b2, (Cout,), jnp.float32) * 0.1

    out = block_forward(x, w1, b1, w2, b2)
    jax.block_until_ready(out)

    ref = _reference(x, w1, b1, w2, b2)
    assert out.shape == (N, Cout, H - 4, W - 4), out.shape
    assert jnp.allclose(out, ref, atol=1e-4, rtol=1e-4), float(jnp.max(jnp.abs(out - ref)))

    print("KERNEL_OK")
</pallas_src>

<mosaic_0001>
module attributes {stable_mosaic.version = 11 : i64} {
  func.func @_block_kernel(%arg0: i32, %arg1: memref<1x4x256xf32, #tpu.memory_space<vmem>>, %arg2: memref<8x36xf32, #tpu.memory_space<vmem>>, %arg3: memref<8x1xf32, #tpu.memory_space<vmem>>, %arg4: memref<8x72xf32, #tpu.memory_space<vmem>>, %arg5: memref<8x1xf32, #tpu.memory_space<vmem>>, %arg6: memref<1x8x188xf32, #tpu.memory_space<vmem>>, %arg7: memref<36x222xf32, #tpu.memory_space<vmem>>, %arg8: memref<72x188xf32, #tpu.memory_space<vmem>>) attributes {dimension_semantics = [#tpu.dimension_semantics<parallel>], iteration_bounds = array<i64: 2>, scalar_prefetch = 0 : i64, scratch_operands = 2 : i64, tpu.core_type = #tpu.core_type<tc>, window_params = [{transform_indices = @transform_0, window_bounds = array<i64: 1, 4, 256>}, {pipeline_mode = #tpu.pipeline_mode<synchronous>, transform_indices = @transform_1, window_bounds = array<i64: 8, 36>}, {pipeline_mode = #tpu.pipeline_mode<synchronous>, transform_indices = @transform_2, window_bounds = array<i64: 8, 1>}, {pipeline_mode = #tpu.pipeline_mode<synchronous>, transform_indices = @transform_3, window_bounds = array<i64: 8, 72>}, {pipeline_mode = #tpu.pipeline_mode<synchronous>, transform_indices = @transform_4, window_bounds = array<i64: 8, 1>}, {transform_indices = @transform_5, window_bounds = array<i64: 1, 8, 188>}]} {
    %c0 = arith.constant 0 : index
    %c0_0 = arith.constant 0 : index
    %c0_1 = arith.constant 0 : index
    %0 = vector.load %arg1[%c0, %c0_0, %c0_1] : memref<1x4x256xf32, #tpu.memory_space<vmem>>, vector<1x4x222xf32>
    %1 = vector.shape_cast %0 : vector<1x4x222xf32> to vector<4x222xf32>
    %c0_2 = arith.constant 0 : index
    %c0_3 = arith.constant 0 : index
    %2 = vector.load %arg7[%c0_2, %c0_3] : memref<36x222xf32, #tpu.memory_space<vmem>>, vector<4x222xf32>
    tpu.vector_store %arg7[%c0_2, %c0_3], %1 {strides = array<i32>} : memref<36x222xf32, #tpu.memory_space<vmem>>, vector<4x222xf32>,
    %c0_4 = arith.constant 0 : index
    %c0_5 = arith.constant 0 : index
    %c1 = arith.constant 1 : index
    %3 = vector.load %arg1[%c0_4, %c0_5, %c1] : memref<1x4x256xf32, #tpu.memory_space<vmem>>, vector<1x4x222xf32>
    %4 = vector.shape_cast %3 : vector<1x4x222xf32> to vector<4x222xf32>
    %c4 = arith.constant 4 : index
    %c0_6 = arith.constant 0 : index
    %5 = vector.load %arg7[%c4, %c0_6] : memref<36x222xf32, #tpu.memory_space<vmem>>, vector<4x222xf32>
    tpu.vector_store %arg7[%c4, %c0_6], %4 {strides = array<i32>} : memref<36x222xf32, #tpu.memory_space<vmem>>, vector<4x222xf32>,
    %c0_7 = arith.constant 0 : index
    %c0_8 = arith.constant 0 : index
    %c2 = arith.constant 2 : index
    %6 = vector.load %arg1[%c0_7, %c0_8, %c2] : memref<1x4x256xf32, #tpu.memory_space<vmem>>, vector<1x4x222xf32>
    %7 = vector.shape_cast %6 : vector<1x4x222xf32> to vector<4x222xf32>
    %c8 = arith.constant 8 : index
    %c0_9 = arith.constant 0 : index
    %8 = vector.load %arg7[%c8, %c0_9] : memref<36x222xf32, #tpu.memory_space<vmem>>, vector<4x222xf32>
    tpu.vector_store %arg7[%c8, %c0_9], %7 {strides = array<i32>} : memref<36x222xf32, #tpu.memory_space<vmem>>, vector<4x222xf32>,
    %c0_10 = arith.constant 0 : index
    %c0_11 = arith.constant 0 : index
    %c16 = arith.constant 16 : index
    %9 = vector.load %arg1[%c0_10, %c0_11, %c16] : memref<1x4x256xf32, #tpu.memory_space<vmem>>, vector<1x4x222xf32>
    %10 = vector.shape_cast %9 : vector<1x4x222xf32> to vector<4x222xf32>
    %c12 = arith.constant 12 : index
    %c0_12 = arith.constant 0 : index
    %11 = vector.load %arg7[%c12, %c0_12] : memref<36x222xf32, #tpu.memory_space<vmem>>, vector<4x222xf32>
    tpu.vector_store %arg7[%c12, %c0_12], %10 {strides = array<i32>} : memref<36x222xf32, #tpu.memory_space<vmem>>, vector<4x222xf32>,
    %c0_13 = arith.constant 0 : index
    %c0_14 = arith.constant 0 : index
    %c17 = arith.constant 17 : index
    %12 = vector.load %arg1[%c0_13, %c0_14, %c17] : memref<1x4x256xf32, #tpu.memory_space<vmem>>, vector<1x4x222xf32>
    %13 = vector.shape_cast %12 : vector<1x4x222xf32> to vector<4x222xf32>
    %c16_15 = arith.constant 16 : index
    %c0_16 = arith.constant 0 : index
    %14 = vector.load %arg7[%c16_15, %c0_16] : memref<36x222xf32, #tpu.memory_space<vmem>>, vector<4x222xf32>
    tpu.vector_store %arg7[%c16_15, %c0_16], %13 {strides = array<i32>} : memref<36x222xf32, #tpu.memory_space<vmem>>, vector<4x222xf32>,
    %c0_17 = arith.constant 0 : index
    %c0_18 = arith.constant 0 : index
    %c18 = arith.constant 18 : index
    %15 = vector.load %arg1[%c0_17, %c0_18, %c18] : memref<1x4x256xf32, #tpu.memory_space<vmem>>, vector<1x4x222xf32>
    %16 = vector.shape_cast %15 : vector<1x4x222xf32> to vector<4x222xf32>
    %c20 = arith.constant 20 : index
    %c0_19 = arith.constant 0 : index
    %17 = vector.load %arg7[%c20, %c0_19] : memref<36x222xf32, #tpu.memory_space<vmem>>, vector<4x222xf32>
    tpu.vector_store %arg7[%c20, %c0_19], %16 {strides = array<i32>} : memref<36x222xf32, #tpu.memory_space<vmem>>, vector<4x222xf32>,
    %c0_20 = arith.constant 0 : index
    %c0_21 = arith.constant 0 : index
    %c32 = arith.constant 32 : index
    %18 = vector.load %arg1[%c0_20, %c0_21, %c32] : memref<1x4x256xf32, #tpu.memory_space<vmem>>, vector<1x4x222xf32>
    %19 = vector.shape_cast %18 : vector<1x4x222xf32> to vector<4x222xf32>
    %c24 = arith.constant 24 : index
    %c0_22 = arith.constant 0 : index
    %20 = vector.load %arg7[%c24, %c0_22] : memref<36x222xf32, #tpu.memory_space<vmem>>, vector<4x222xf32>
    tpu.vector_store %arg7[%c24, %c0_22], %19 {strides = array<i32>} : memref<36x222xf32, #tpu.memory_space<vmem>>, vector<4x222xf32>,
    %c0_23 = arith.constant 0 : index
    %c0_24 = arith.constant 0 : index
    %c33 = arith.constant 33 : index
    %21 = vector.load %arg1[%c0_23, %c0_24, %c33] : memref<1x4x256xf32, #tpu.memory_space<vmem>>, vector<1x4x222xf32>
    %22 = vector.shape_cast %21 : vector<1x4x222xf32> to vector<4x222xf32>
    %c28 = arith.constant 28 : index
    %c0_25 = arith.constant 0 : index
    %23 = vector.load %arg7[%c28, %c0_25] : memref<36x222xf32, #tpu.memory_space<vmem>>, vector<4x222xf32>
    tpu.vector_store %arg7[%c28, %c0_25], %22 {strides = array<i32>} : memref<36x222xf32, #tpu.memory_space<vmem>>, vector<4x222xf32>,
    %c0_26 = arith.constant 0 : index
    %c0_27 = arith.constant 0 : index
    %c34 = arith.constant 34 : index
    %24 = vector.load %arg1[%c0_26, %c0_27, %c34] : memref<1x4x256xf32, #tpu.memory_space<vmem>>, vector<1x4x222xf32>
    %25 = vector.shape_cast %24 : vector<1x4x222xf32> to vector<4x222xf32>
    %c32_28 = arith.constant 32 : index
    %c0_29 = arith.constant 0 : index
    %26 = vector.load %arg7[%c32_28, %c0_29] : memref<36x222xf32, #tpu.memory_space<vmem>>, vector<4x222xf32>
    tpu.vector_store %arg7[%c32_28, %c0_29], %25 {strides = array<i32>} : memref<36x222xf32, #tpu.memory_space<vmem>>, vector<4x222xf32>,
    %c0_30 = arith.constant 0 : index
    %c0_31 = arith.constant 0 : index
    %27 = vector.load %arg2[%c0_30, %c0_31] : memref<8x36xf32, #tpu.memory_space<vmem>>, vector<8x36xf32>
    %c0_32 = arith.constant 0 : index
    %c0_33 = arith.constant 0 : index
    %28 = vector.load %arg7[%c0_32, %c0_33] : memref<36x222xf32, #tpu.memory_space<vmem>>, vector<36x222xf32>
    %cst = arith.constant dense<0.000000e+00> : vector<8x222xf32>
    %29 = tpu.matmul %27, %28, %cst {dimension_numbers = #tpu.dot_dimension_numbers<[1], [0], [0], [1], [0, 0, 1, 1], [], []>} : vector<8x36xf32>, vector<36x222xf32>, vector<8x222xf32> -> vector<8x222xf32>
    %c0_34 = arith.constant 0 : index
    %c0_35 = arith.constant 0 : index
    %30 = vector.load %arg3[%c0_34, %c0_35] : memref<8x1xf32, #tpu.memory_space<vmem>>, vector<8x1xf32>
    %31 = vector.broadcast %30 : vector<8x1xf32> to vector<8x222xf32>
    %32 = arith.addf %29, %31 : vector<8x222xf32>
    %cst_36 = arith.constant 0.000000e+00 : f32
    %33 = vector.broadcast %cst_36 : f32 to vector<8x222xf32>
    %34 = arith.maximumf %32, %33 : vector<8x222xf32>
    %35 = vector.extract_strided_slice %34 {offsets = [0, 0], sizes = [8, 188], strides = [1, 1]} : vector<8x222xf32> to vector<8x188xf32>
    %c0_37 = arith.constant 0 : index
    %c0_38 = arith.constant 0 : index
    %36 = vector.load %arg8[%c0_37, %c0_38] : memref<72x188xf32, #tpu.memory_space<vmem>>, vector<8x188xf32>
    tpu.vector_store %arg8[%c0_37, %c0_38], %35 {strides = array<i32>} : memref<72x188xf32, #tpu.memory_space<vmem>>, vector<8x188xf32>,
    %37 = vector.extract_strided_slice %34 {offsets = [0, 1], sizes = [8, 188], strides = [1, 1]} : vector<8x222xf32> to vector<8x188xf32>
    %c8_39 = arith.constant 8 : index
    %c0_40 = arith.constant 0 : index
    %38 = vector.load %arg8[%c8_39, %c0_40] : memref<72x188xf32, #tpu.memory_space<vmem>>, vector<8x188xf32>
    tpu.vector_store %arg8[%c8_39, %c0_40], %37 {strides = array<i32>} : memref<72x188xf32, #tpu.memory_space<vmem>>, vector<8x188xf32>,
    %39 = vector.extract_strided_slice %34 {offsets = [0, 2], sizes = [8, 188], strides = [1, 1]} : vector<8x222xf32> to vector<8x188xf32>
    %c16_41 = arith.constant 16 : index
    %c0_42 = arith.constant 0 : index
    %40 = vector.load %arg8[%c16_41, %c0_42] : memref<72x188xf32, #tpu.memory_space<vmem>>, vector<8x188xf32>
    tpu.vector_store %arg8[%c16_41, %c0_42], %39 {strides = array<i32>} : memref<72x188xf32, #tpu.memory_space<vmem>>, vector<8x188xf32>,
    %41 = vector.extract_strided_slice %34 {offsets = [0, 16], sizes = [8, 188], strides = [1, 1]} : vector<8x222xf32> to vector<8x188xf32>
    %c24_43 = arith.constant 24 : index
    %c0_44 = arith.constant 0 : index
    %42 = vector.load %arg8[%c24_43, %c0_44] : memref<72x188xf32, #tpu.memory_space<vmem>>, vector<8x188xf32>
    tpu.vector_store %arg8[%c24_43, %c0_44], %41 {strides = array<i32>} : memref<72x188xf32, #tpu.memory_space<vmem>>, vector<8x188xf32>,
    %43 = vector.extract_strided_slice %34 {offsets = [0, 17], sizes = [8, 188], strides = [1, 1]} : vector<8x222xf32> to vector<8x188xf32>
    %c32_45 = arith.constant 32 : index
    %c0_46 = arith.constant 0 : index
    %44 = vector.load %arg8[%c32_45, %c0_46] : memref<72x188xf32, #tpu.memory_space<vmem>>, vector<8x188xf32>
    tpu.vector_store %arg8[%c32_45, %c0_46], %43 {strides = array<i32>} : memref<72x188xf32, #tpu.memory_space<vmem>>, vector<8x188xf32>,
    %45 = vector.extract_strided_slice %34 {offsets = [0, 18], sizes = [8, 188], strides = [1, 1]} : vector<8x222xf32> to vector<8x188xf32>
    %c40 = arith.constant 40 : index
    %c0_47 = arith.constant 0 : index
    %46 = vector.load %arg8[%c40, %c0_47] : memref<72x188xf32, #tpu.memory_space<vmem>>, vector<8x188xf32>
    tpu.vector_store %arg8[%c40, %c0_47], %45 {strides = array<i32>} : memref<72x188xf32, #tpu.memory_space<vmem>>, vector<8x188xf32>,
    %47 = vector.extract_strided_slice %34 {offsets = [0, 32], sizes = [8, 188], strides = [1, 1]} : vector<8x222xf32> to vector<8x188xf32>
    %c48 = arith.constant 48 : index
    %c0_48 = arith.constant 0 : index
    %48 = vector.load %arg8[%c48, %c0_48] : memref<72x188xf32, #tpu.memory_space<vmem>>, vector<8x188xf32>
    tpu.vector_store %arg8[%c48, %c0_48], %47 {strides = array<i32>} : memref<72x188xf32, #tpu.memory_space<vmem>>, vector<8x188xf32>,
    %49 = vector.extract_strided_slice %34 {offsets = [0, 33], sizes = [8, 188], strides = [1, 1]} : vector<8x222xf32> to vector<8x188xf32>
    %c56 = arith.constant 56 : index
    %c0_49 = arith.constant 0 : index
    %50 = vector.load %arg8[%c56, %c0_49] : memref<72x188xf32, #tpu.memory_space<vmem>>, vector<8x188xf32>
    tpu.vector_store %arg8[%c56, %c0_49], %49 {strides = array<i32>} : memref<72x188xf32, #tpu.memory_space<vmem>>, vector<8x188xf32>,
    %51 = vector.extract_strided_slice %34 {offsets = [0, 34], sizes = [8, 188], strides = [1, 1]} : vector<8x222xf32> to vector<8x188xf32>
    %c64 = arith.constant 64 : index
    %c0_50 = arith.constant 0 : index
    %52 = vector.load %arg8[%c64, %c0_50] : memref<72x188xf32, #tpu.memory_space<vmem>>, vector<8x188xf32>
    tpu.vector_store %arg8[%c64, %c0_50], %51 {strides = array<i32>} : memref<72x188xf32, #tpu.memory_space<vmem>>, vector<8x188xf32>,
    %c0_51 = arith.constant 0 : index
    %c0_52 = arith.constant 0 : index
    %53 = vector.load %arg4[%c0_51, %c0_52] : memref<8x72xf32, #tpu.memory_space<vmem>>, vector<8x72xf32>
    %c0_53 = arith.constant 0 : index
    %c0_54 = arith.constant 0 : index
    %54 = vector.load %arg8[%c0_53, %c0_54] : memref<72x188xf32, #tpu.memory_space<vmem>>, vector<72x188xf32>
    %cst_55 = arith.constant dense<0.000000e+00> : vector<8x188xf32>
    %55 = tpu.matmul %53, %54, %cst_55 {dimension_numbers = #tpu.dot_dimension_numbers<[1], [0], [0], [1], [0, 0, 1, 1], [], []>} : vector<8x72xf32>, vector<72x188xf32>, vector<8x188xf32> -> vector<8x188xf32>
    %c0_56 = arith.constant 0 : index
    %c0_57 = arith.constant 0 : index
    %56 = vector.load %arg5[%c0_56, %c0_57] : memref<8x1xf32, #tpu.memory_space<vmem>>, vector<8x1xf32>
    %57 = vector.broadcast %56 : vector<8x1xf32> to vector<8x188xf32>
    %58 = arith.addf %55, %57 : vector<8x188xf32>
    %c0_58 = arith.constant 0 : index
    %c0_59 = arith.constant 0 : index
    %c0_60 = arith.constant 0 : index
    %59 = vector.load %arg6[%c0_58, %c0_59, %c0_60] : memref<1x8x188xf32, #tpu.memory_space<vmem>>, vector<1x8x188xf32>
    %60 = vector.shape_cast %59 : vector<1x8x188xf32> to vector<8x188xf32>
    %61 = vector.shape_cast %58 : vector<8x188xf32> to vector<1x8x188xf32>
    tpu.vector_store %arg6[%c0_58, %c0_59, %c0_60], %61 {strides = array<i32>} : memref<1x8x188xf32, #tpu.memory_space<vmem>>, vector<1x8x188xf32>,
    return
  }
  func.func @transform_0(%arg0: i32) -> (i32, i32, i32) {
    %c0_i32 = arith.constant 0 : i32
    %c0_i32_0 = arith.constant 0 : i32
    %c0_i32_1 = arith.constant 0 : i32
    return %arg0, %c0_i32, %c0_i32_0 : i32, i32, i32
  }
  func.func @transform_1(%arg0: i32) -> (i32, i32) {
    %c0_i32 = arith.constant 0 : i32
    %c0_i32_0 = arith.constant 0 : i32
    %c0_i32_1 = arith.constant 0 : i32
    return %c0_i32, %c0_i32_0 : i32, i32
  }
  func.func @transform_2(%arg0: i32) -> (i32, i32) {
    %c0_i32 = arith.constant 0 : i32
    %c0_i32_0 = arith.constant 0 : i32
    %c0_i32_1 = arith.constant 0 : i32
    return %c0_i32, %c0_i32_0 : i32, i32
  }
  func.func @transform_3(%arg0: i32) -> (i32, i32) {
    %c0_i32 = arith.constant 0 : i32
    %c0_i32_0 = arith.constant 0 : i32
    %c0_i32_1 = arith.constant 0 : i32
    return %c0_i32, %c0_i32_0 : i32, i32
  }
  func.func @transform_4(%arg0: i32) -> (i32, i32) {
    %c0_i32 = arith.constant 0 : i32
    %c0_i32_0 = arith.constant 0 : i32
    %c0_i32_1 = arith.constant 0 : i32
    return %c0_i32, %c0_i32_0 : i32, i32
  }
  func.func @transform_5(%arg0: i32) -> (i32, i32, i32) {
    %c0_i32 = arith.constant 0 : i32
    %c0_i32_0 = arith.constant 0 : i32
    %c0_i32_1 = arith.constant 0 : i32
    return %arg0, %c0_i32, %c0_i32_0 : i32, i32, i32
  }
}

</mosaic_0001>

<bundles_post_ra>
// kernel: tpu_custom_call.1
= control target key start
LH: loop header
LB: loop body
LE: loop exit
PB: predicated region body
PF: predicated region fallthrough
CT: control target
= control target key end

     0   :  { %10 = vsyncpa [#allocation5], 0  ;;  %s1170_s0 = inlined_call_operand.vmem [shape: f32[2,4,256], index: 0, kind: input, shape index: {}]   ;;  %s1171_s1 = inlined_call_operand.hbm [shape: f32[8,36], index: 1, kind: input, shape index: {}]   ;;  %s1172_s2 = inlined_call_operand.vmem [shape: f32[8,1], index: 2, kind: input, shape index: {}]   ;;  %s1173_s3 = inlined_call_operand.vmem [shape: f32[8,72], index: 3, kind: input, shape index: {}]   ;;  %s1174_s4 = inlined_call_operand.vmem [shape: f32[8,1], index: 4, kind: input, shape index: {}]   ;;  %s1175_s5 = inlined_call_operand.hbm [shape: f32[2,8,188], index: 5, kind: output, shape index: {}]  }
   0x1   :  { %11 = vsyncpa [#allocation6], 0 }
   0x2   :  { %13 = vsyncpa [#allocation6 + $0x1], 0  ;;  %s959_s18 = smov 0   ;;  %s961_s19 = smov 0  }
   0x3   :  { %s963_s20 = smov 0   ;;  %s965_s21 = smov 0  }
   0x4 LB: > { %s980_s22 = sadd.s32 4294967295, %s915_s21   ;;  %s714_s23 = sadd.s32 4294967294, %s915_s21   ;;  %s915_s21 = sphi %s965_s21, %s1191_s21   ;;  %s911_s20 = sphi %s963_s20, %s1190_s20   ;;  %s907_s19 = sphi %s961_s19, %s1189_s19   ;;  %s903_s18 = sphi %s959_s18, %s1188_s18  }
   0x5   : > { %s984_s24 = sadd.s32 1, %s915_s21   ;;  %s136_s25 = sadd.s32 1, %s911_s20 }
   0x6   : > { %s133_s26 = ssub.s32 %s915_s21, %s984_s24  ;;  %p146_p0 = scmp.ne.s32.totalorder %s911_s20, %s907_s19 }
   0x7   : > { %p134_p1 = scmp.eq.s32.totalorder %s133_s26, 0  ;;  %p147_p2 = scmp.eq.s32.totalorder %s980_s22, 1 }
   0x8   : > { %p152_p3 = scmp.ne.s32.totalorder %s907_s19, %s903_s18  ;;  %p153_p4 = scmp.eq.s32.totalorder %s714_s23, 1 }
   0x9   : > { %s995_s27 = scalar_select %p134_p1, %s911_s20, %s136_s25  }
   0xa   : > { %p997_p5 = por %p147_p2, %p146_p0  ;;  %p1001_p6 = por %p153_p4, %p152_p3 }
   0xb   : > { %p715_p7 = scmp.ge.s32.totalorder %s915_s21, 1  ;;  %p160_p8 = scmp.lt.s32.totalorder %s915_s21, 3 }
   0xc   : > { %s1179_s28 = scalar_select %p997_p5, 1, 0 }
   0xd   : > { %s1180_s29 = scalar_select %p1001_p6, 1, 0 }
   0xe   : > { %p1176_p9 = scmp.eq.s32.totalorder %s980_s22, 0  ;;  %p1008_p10 = pnand %p715_p7, %p160_p8 }
   0xf   : > { %s917_s6 = smov [#allocation4]   ;;  %s821_s11 = scalar_lea.hbm %s1171_s1, 128 }
  0x10   : > { %s1181_s30 = scalar_select %p1008_p10, 1, 0 }
  0x11   : > { %s173_s7 = sshll.u32 %s917_s6, 4  ;;  %p764_p11 = pneg %p1008_p10  ;;  %s174_s7 = int_to_ptr.vmem [resolvable:$true] %s173_s7 }
  0x12   : > { %p822_p13 = scmp.ne.s32.totalorder %s1171_s1, %s821_s11  ;;  %p828_p3 = scmp.lt.u32.totalorder %s821_s11, %s1171_s1 }
  0x13   : > { %p1016_p12 = pnand %p1176_p9, %p764_p11 }
  0x15   : > { %p823_p0 = pneg %p1016_p12 }
  0x17   : > { %p824_p1 = pnand %p823_p0, %p822_p13 }
  0x19   : > { %p825_p2 = pneg %p824_p1 }
  0x1b   : > { %p830_p4 = pnand %p828_p3, %p825_p2 }
  0x1d   : > { %833 = shalt.err (!%p830_p4)
}
  0x1e   : > { %s834_s16 = scalar_lea.vmem %s174_s7, 128  ;;  %p842_p9 = scmp.lt.s32.totalorder %s174_s7, %s174_s7 }
  0x1f   : > { %p835_p7 = scmp.ne.s32.totalorder %s174_s7, %s834_s16  ;;  %p843_p6 = scmp.lt.s32.totalorder %s834_s16, %s834_s16 }
  0x21   : > { %p837_p8 = pnand %p835_p7, %p823_p0  ;;  %p844_p5 = por %p843_p6, %p842_p9 }
  0x23   : > { %p838_p11 = pneg %p837_p8 }
  0x25   : > { %p845_p10 = pnand %p844_p5, %p838_p11 }
  0x27   : > { %848 = shalt.err (!%p845_p10)
}
  0x28   : > { %767 = dma.hbm_to_vmem [thread:$0]  (!%p1016_p12), %s1171_s1, 128, %s174_s7, [#allocation5]  }
  0x29   : > { %p1183_p13 = scmp.ne.s32.totalorder %s1181_s30, 0 }
  0x2a   : > { %p1184_p1 = scmp.eq.s32.totalorder (!%p1183_p13), %s980_s22, 0 }
  0x2b   : > { %203 = sbr.rel (%p1183_p13) target bundleno = 817 (0x331), region = 40 }
  0x32   : > { %894 = dma.done.wait (%p1184_p1), [#allocation5], 128   ;;  %p1185_p0 = pmov %p1184_p1 }
  0x33   : > { %p231_p6 = scmp.lt.s32.totalorder %s980_s22, 1  ;;  %vm241_vm0 = vcmask 764928   ;;  %s918_s7 = smov 126   ;;  %v925_v3 = vmov 0.0   ;;  %v927_v4 = vmov 0   ;;  %v359_v5 = vld [vmem:[%s1172_s2] sm:$0xff] }
  0x34   : > { %896 = vsyncadd (%p1185_p0), [#allocation5], 4294967168  ;;  %s919_s30 = smov 127   ;;  %s920_s10 = smov 112   ;;  %440 = vmatprep.mubr.f32.mxu0 %v925_v3  ;;  %619 = vmatprep.mubr.f32.mxu1 %v925_v3  ;;  %vm255_vm1 = vcmask 769028   ;;  %vm250_vm2 = vcmask 1039360  }
  0x35   : > { %s232_s25 = scalar_select %p231_p6, %s980_s22, 1  ;;  %818 = vset.pattern.permute.xlu0 %v927_v4  ;;  %vm264_vm3 = vcmask 1031168   ;;  %vm277_vm4 = vcmask 916480   ;;  %vm290_vm5 = vcmask 908288   ;;  %vm303_vm6 = vcmask 900096   ;;  %v348_v44 = vld [vmem:[#allocation4] sm:$0xff] }
  0x36   : > { %s921_s11 = smov 111   ;;  %s922_s12 = smov 110   ;;  %vm316_vm7 = vcmask 785408   ;;  %vm329_vm8 = vcmask 777216   ;;  %vm342_vm9 = vcmask 769024   ;;  %vm369_vm10 = vcmask 1043456  }
  0x37   : > { %s732_s26 = sshll.u32 %s232_s25, 3  ;;  %s923_s13 = smov 96   ;;  %vm365_vm11 = vcmask 293888   ;;  %vm450_vm12 = vcmask 490496   ;;  %v545_v52 = vld [vmem:[%s1174_s4] sm:$0xff]  ;;  %vm551_vm13 = vcmask 588800  }
  0x38   : > { %s235_s9 = scalar_lea.vmem %s1170_s0, %s732_s26  ;;  %s924_s14 = smov 95  }
  0x39   : > { %v257_v0 = vld [vmem:[%s235_s9] sm:$0xff]  ;;  %s926_s15 = smov 94   ;;  %s228_s8 = sand.u32 1, %s907_s19  }
  0x3a   : > { %260 = vrot.lane.b32.xlu1 %v257_v0, %s918_s7  ;;  %v259_v1 = vcombine.high %v257_v0, %v257_v0  ;;  %248 = vrot.lane.b32.xlu0 %v257_v0, %s919_s30  ;;  %v245_v2 = vcombine.low %v257_v0, %v257_v0  ;;  %240 = vst [vmem:[#allocation2] sm:$0xf] %v257_v0  ;;  %s720_s9 = sshll.u32 %s228_s8, 4  ;;  %p1186_p9 = scmp.ne.s32.totalorder %s1179_s28, 0 }
  0x3c   : > { %242 = vst.msk [vmem:[#allocation2 + $0x8] sm:$0xf] %vm241_vm0, %v259_v1 }
  0x3e   : > { %275 = vrot.lane.b32.xlu1 %v257_v0, %s920_s10  ;;  %246 = vrot.lane.b32.xlu0 %v245_v2, %s919_s30 }
  0x42   : > { %262 = vrot.lane.b32.xlu1 %v259_v1, %s918_s7  ;;  %273 = vrot.lane.b32.xlu0 %v245_v2, %s920_s10 }
  0x46   : > { %288 = vrot.lane.b32.xlu1 %v259_v1, %s921_s11  ;;  %286 = vrot.lane.b32.xlu0 %v257_v0, %s921_s11 }
  0x4a   : > { %301 = vrot.lane.b32.xlu1 %v257_v0, %s922_s12  ;;  %299 = vrot.lane.b32.xlu0 %v245_v2, %s922_s12 }
  0x4e   : > { %314 = vrot.lane.b32.xlu1 %v259_v1, %s923_s13  ;;  %312 = vrot.lane.b32.xlu0 %v257_v0, %s923_s13 }
  0x52   : > { %327 = vrot.lane.b32.xlu1 %v257_v0, %s924_s14  ;;  %325 = vrot.lane.b32.xlu0 %v245_v2, %s924_s14 }
  0x56   : > { %340 = vrot.lane.b32.xlu1 %v259_v1, %s926_s15  ;;  %338 = vrot.lane.b32.xlu0 %v257_v0, %s926_s15 }
  0x5a   : > { %362 = vperm.xlu0 %818, %v359_v5  }
  0xac   : > { %v261_v6 = vpop.permute.xlu1 %260  ;;  %v249_v7 = vpop.permute.xlu0 %248 }
  0xad   : > { %256 = vst.msk [vmem:[#allocation2 + $0x8] sm:$0xf0] %vm255_vm1, %v249_v7 }
  0xb0   : > { %v276_v8 = vpop.permute.xlu1 %275  ;;  %v247_v9 = vpop.permute.xlu0 %246 }
  0xb1   : > { %282 = vst.msk [vmem:[#allocation2 + $0x18] sm:$0xf0] %vm255_vm1, %v276_v8  ;;  %v251_v10 = vsel %vm250_vm2, %v247_v9, %v249_v7 }
  0xb2   : > { %254 = vst [vmem:[#allocation2] sm:$0xf0] %v251_v10 }
  0xb4   : > { %v263_v11 = vpop.permute.xlu1 %262  ;;  %v274_v12 = vpop.permute.xlu0 %273  ;;  %v350_v20 = vld [vmem:[#allocation2 + $0x8] sm:$0xff] }
  0xb5   : > { %v265_v13 = vsel %vm264_vm3, %v261_v6, %v263_v11  ;;  %269 = vst.msk [vmem:[#allocation2 + $0x18] sm:$0xf] %vm241_vm0, %v263_v11  ;;  %v278_v14 = vsel %vm277_vm4, %v274_v12, %v276_v8 }
  0xb6   : > { %268 = vst [vmem:[#allocation2 + $0x10] sm:$0xf] %v265_v13  ;;  %281 = vst [vmem:[#allocation2 + $0x10] sm:$0xf0] %v278_v14 }
  0xb8   : > { %v289_v15 = vpop.permute.xlu1 %288  ;;  %v287_v16 = vpop.permute.xlu0 %286 }
  0xb9   : > { %295 = vst.msk [vmem:[#allocation2 + $0x28] sm:$0xf] %vm241_vm0, %v289_v15  ;;  %v291_v17 = vsel %vm290_vm5, %v287_v16, %v289_v15  ;;  %v349_v24 = vld [vmem:[#allocation2] sm:$0xff] }
  0xba   : > { %294 = vst [vmem:[#allocation2 + $0x20] sm:$0xf] %v291_v17 }
  0xbc   : > { %v302_v18 = vpop.permute.xlu1 %301  ;;  %v300_v19 = vpop.permute.xlu0 %299  ;;  %v352_v21 = vld [vmem:[#allocation2 + $0x18] sm:$0xff] }
  0xbd   : > { %308 = vst.msk [vmem:[#allocation2 + $0x28] sm:$0xf0] %vm255_vm1, %v302_v18  ;;  %v304_v22 = vsel %vm303_vm6, %v300_v19, %v302_v18  ;;  %v734_v23 = vpack.c.bf16 %v352_v21, %v350_v20  ;;  %v351_v25 = vld [vmem:[#allocation2 + $0x10] sm:$0xff] }
  0xbe   : > { %307 = vst [vmem:[#allocation2 + $0x20] sm:$0xf0] %v304_v22  ;;  %v736_v26 = vpack.c.bf16 %v351_v25, %v349_v24 }
  0xbf   : > { %735 = vmatprep.subr.bf16.mxu0 %v734_v23 }
  0xc0   : > { %v315_v27 = vpop.permute.xlu1 %314  ;;  %v313_v28 = vpop.permute.xlu0 %312  ;;  %737 = vmatpush1.bf16.msra.mxu0 %v736_v26 }
  0xc1   : > { %321 = vst.msk [vmem:[#allocation2 + $0x38] sm:$0xf] %vm241_vm0, %v315_v27  ;;  %v317_v29 = vsel %vm316_vm7, %v313_v28, %v315_v27 }
  0xc2   : > { %320 = vst [vmem:[#allocation2 + $0x30] sm:$0xf] %v317_v29 }
  0xc4   : > { %v328_v30 = vpop.permute.xlu1 %327  ;;  %v326_v31 = vpop.permute.xlu0 %325  ;;  %v354_v36 = vld [vmem:[#allocation2 + $0x28] sm:$0xff] }
  0xc5   : > { %334 = vst.msk [vmem:[#allocation2 + $0x38] sm:$0xf0] %vm255_vm1, %v328_v30  ;;  %v330_v32 = vsel %vm329_vm8, %v326_v31, %v328_v30  ;;  %v353_v39 = vld [vmem:[#allocation2 + $0x20] sm:$0xff] }
  0xc6   : > { %333 = vst [vmem:[#allocation2 + $0x30] sm:$0xf0] %v330_v32  ;;  %v526_v30 = vld [vmem:[%s1173_s3] sm:$0xff] }
  0xc8   : > { %v341_v33 = vpop.permute.xlu1 %340  ;;  %v339_v34 = vpop.permute.xlu0 %338 }
  0xc9   : > { %347 = vst.msk [vmem:[#allocation2 + $0x48] sm:$0xf] %vm241_vm0, %v341_v33  ;;  %v343_v35 = vsel %vm342_vm9, %v339_v34, %v341_v33 }
  0xca   : > { %346 = vst [vmem:[#allocation2 + $0x40] sm:$0xf] %v343_v35 }
  0xcc   : > { %v356_v37 = vld [vmem:[#allocation2 + $0x38] sm:$0xff] }
  0xcd   : > { %v738_v38 = vpack.c.bf16 %v356_v37, %v354_v36  ;;  %v355_v40 = vld [vmem:[#allocation2 + $0x30] sm:$0xff] }
  0xce   : > { %v740_v41 = vpack.c.bf16 %v355_v40, %v353_v39 }
  0xcf   : > { %739 = vmatprep.subr.bf16.mxu0 %v738_v38 }
  0xd0   : > { %741 = vmatpush1.bf16.msra.mxu0 %v740_v41  ;;  %v358_v42 = vld [vmem:[#allocation2 + $0x48] sm:$0xf] }
  0xd1   : > { %723 = vmatprep.subr.msk.mxu0 %vm369_vm10, %v358_v42  ;;  %v357_v43 = vld [vmem:[#allocation2 + $0x40] sm:$0xf] }
  0xd4   : > { %724 = vmatpush1.msk.msra.mxu0 %vm369_vm10, %v357_v43 }
  0xd5   : > { %725 = vmatmul.mubr.msk.f32.vlgmr.msra.gmra.mrb[0].mxu0 %vm365_vm11, %v348_v44 }
  0xd9   : > { %v363_v45 = vpop.permute.xlu0 %362 }
 0x1a8   : > { %v442_v46 = vpop.f32.mrb[0].mxu0 }
 0x1a9   : > { %v443_v47 = vadd.f32 %v442_v46, %v363_v45  ;;  %v444_v48 = vpop.f32.mrb[1].mxu0 }
 0x1aa   : > { %v445_v49 = vadd.f32 %v444_v48, %v363_v45 }
 0x1ab   : > { %v447_v50 = vmax.f32 %v443_v47, 0.0 }
 0x1ac   : > { %v448_v51 = vmax.f32 %v445_v49, 0.0 }
 0x1ad   : > { %463 = vrot.lane.b32.xlu0 %v447_v50, %s918_s7  ;;  %454 = vrot.lane.b32.xlu1 %v447_v50, %s919_s30 }
 0x1ae   : > { %451 = vst.msk [vmem:[#allocation3 + $0x8] sm:$0xff] %vm450_vm12, %v448_v51 }
 0x1b1   : > { %472 = vrot.lane.b32.xlu0 %v447_v50, %s920_s10  ;;  %456 = vrot.lane.b32.xlu1 %v448_v51, %s919_s30  ;;  %s230_s30 = scalar_lea.vmem [#allocation7], %s720_s9 }
 0x1b5   : > { %481 = vrot.lane.b32.xlu0 %v447_v50, %s921_s11  ;;  %465 = vrot.lane.b32.xlu1 %v448_v51, %s918_s7  ;;  %v528_v62 = vld [vmem:[#allocation3 + $0x8] sm:$0xff]  ;;  %s733_s7 = sshll.u32 %s980_s22, 8  ;;  %s629_s22 = scalar_lea.sflag [#allocation6], %s228_s8 }
 0x1b9   : > { %490 = vrot.lane.b32.xlu0 %v447_v50, %s922_s12  ;;  %474 = vrot.lane.b32.xlu1 %v448_v51, %s920_s10  ;;  %s643_s10 = sshll.u32 %s230_s30, 4  ;;  %s1129_s10 = int_to_ptr.vmem [resolvable:$true] %s643_s10 }
 0x1bd   : > { %499 = vrot.lane.b32.xlu0 %v447_v50, %s923_s13  ;;  %483 = vrot.lane.b32.xlu1 %v448_v51, %s921_s11 }
 0x1c1   : > { %508 = vrot.lane.b32.xlu0 %v447_v50, %s924_s14  ;;  %492 = vrot.lane.b32.xlu1 %v448_v51, %s922_s12 }
 0x1c5   : > { %517 = vrot.lane.b32.xlu0 %v447_v50, %s926_s15  ;;  %501 = vrot.lane.b32.xlu1 %v448_v51, %s923_s13  ;;  %s1127_s13 = scalar_lea.hbm %s1175_s5, %s733_s7 }
 0x1c9   : > { %548 = vperm.xlu0 %818, %v545_v52   ;;  %510 = vrot.lane.b32.xlu1 %v448_v51, %s924_s14  ;;  %s849_s14 = scalar_lea.vmem %s1129_s10, 256 }
 0x1ca   : > { %p850_p5 = scmp.ne.s32.totalorder %s1129_s10, %s849_s14 }
 0x1cc   : > { %p851_p10 = pnand %p850_p5, %p1186_p9 }
 0x1cd   : > { %519 = vrot.lane.b32.xlu1 %v448_v51, %s926_s15  ;;  %s928_s15 = smov [#allocation7]  }
 0x1ce   : > { %p852_p12 = pneg %p851_p10  ;;  %s853_s16 = sshll.u32 %s928_s15, 4  ;;  %s854_s16 = int_to_ptr.vmem [resolvable:$false] %s853_s16 }
 0x1cf   : > { %s855_s17 = scalar_lea.vmem %s854_s16, 512  ;;  %p856_p2 = scmp.lt.s32.totalorder %s1129_s10, %s854_s16 }
 0x1d0   : > { %p857_p3 = scmp.lt.s32.totalorder %s855_s17, %s849_s14 }
 0x1d2   : > { %p858_p4 = por %p857_p3, %p856_p2 }
 0x1d4   : > { %p859_p7 = pnand %p858_p4, %p852_p12 }
 0x21f   : > { %v464_v53 = vpop.permute.xlu0 %463  ;;  %v455_v54 = vpop.permute.xlu1 %454 }
 0x223   : > { %v473_v55 = vpop.permute.xlu0 %472  ;;  %v457_v56 = vpop.permute.xlu1 %456 }
 0x224   : > { %v458_v57 = vsel %vm250_vm2, %v455_v54, %v457_v56  ;;  %462 = vst.msk [vmem:[#allocation3 + $0x18] sm:$0xff] %vm450_vm12, %v457_v56 }
 0x225   : > { %v744_v3 = vpack.c.bf16 %v458_v57, %v447_v50 }
 0x227   : > { %v482_v58 = vpop.permute.xlu0 %481  ;;  %v466_v59 = vpop.permute.xlu1 %465 }
 0x228   : > { %v467_v60 = vsel %vm264_vm3, %v464_v53, %v466_v59  ;;  %471 = vst.msk [vmem:[#allocation3 + $0x28] sm:$0xff] %vm450_vm12, %v466_v59 }
 0x22b   : > { %v475_v61 = vpop.permute.xlu1 %474  ;;  %v530_v63 = vld [vmem:[#allocation3 + $0x18] sm:$0xff]  ;;  %v491_v2 = vpop.permute.xlu0 %490 }
 0x22c   : > { %v476_v0 = vsel %vm277_vm4, %v473_v55, %v475_v61  ;;  %480 = vst.msk [vmem:[#allocation3 + $0x38] sm:$0xff] %vm450_vm12, %v475_v61  ;;  %v742_v1 = vpack.c.bf16 %v530_v63, %v528_v62 }
 0x22d   : > { %v748_v12 = vpack.c.bf16 %v476_v0, %v467_v60 }
 0x22e   : > { %743 = vmatprep.subr.bf16.mxu1 %v742_v1 }
 0x22f   : > { %v484_v4 = vpop.permute.xlu1 %483  ;;  %745 = vmatpush1.bf16.msra.mxu1 %v744_v3  ;;  %v500_v6 = vpop.permute.xlu0 %499  ;;  %v532_v8 = vld [vmem:[#allocation3 + $0x28] sm:$0xff] }
 0x230   : > { %v485_v5 = vsel %vm290_vm5, %v482_v58, %v484_v4  ;;  %489 = vst.msk [vmem:[#allocation3 + $0x48] sm:$0xff] %vm450_vm12, %v484_v4 }
 0x233   : > { %v493_v7 = vpop.permute.xlu1 %492  ;;  %v534_v9 = vld [vmem:[#allocation3 + $0x38] sm:$0xff]  ;;  %v509_v15 = vpop.permute.xlu0 %508 }
 0x234   : > { %v494_v10 = vsel %vm303_vm6, %v491_v2, %v493_v7  ;;  %498 = vst.msk [vmem:[#allocation3 + $0x58] sm:$0xff] %vm450_vm12, %v493_v7  ;;  %v746_v11 = vpack.c.bf16 %v534_v9, %v532_v8 }
 0x235   : > { %v752_v21 = vpack.c.bf16 %v494_v10, %v485_v5 }
 0x236   : > { %747 = vmatprep.subr.bf16.mxu1 %v746_v11 }
 0x237   : > { %v502_v13 = vpop.permute.xlu1 %501  ;;  %749 = vmatpush1.bf16.msra.mxu1 %v748_v12  ;;  %v536_v17 = vld [vmem:[#allocation3 + $0x48] sm:$0xff]  ;;  %v518_v22 = vpop.permute.xlu0 %517 }
 0x238   : > { %v503_v14 = vsel %vm316_vm7, %v500_v6, %v502_v13  ;;  %507 = vst.msk [vmem:[#allocation3 + $0x68] sm:$0xff] %vm450_vm12, %v502_v13 }
 0x23b   : > { %v511_v16 = vpop.permute.xlu1 %510  ;;  %v538_v18 = vld [vmem:[#allocation3 + $0x58] sm:$0xff] }
 0x23c   : > { %v512_v19 = vsel %vm329_vm8, %v509_v15, %v511_v16  ;;  %516 = vst.msk [vmem:[#allocation3 + $0x78] sm:$0xff] %vm450_vm12, %v511_v16  ;;  %v750_v20 = vpack.c.bf16 %v538_v18, %v536_v17 }
 0x23d   : > { %v756_v28 = vpack.c.bf16 %v512_v19, %v503_v14 }
 0x23e   : > { %751 = vmatprep.subr.bf16.mxu1 %v750_v20 }
 0x23f   : > { %v520_v23 = vpop.permute.xlu1 %519  ;;  %753 = vmatpush1.bf16.msra.mxu1 %v752_v21  ;;  %v540_v25 = vld [vmem:[#allocation3 + $0x68] sm:$0xff] }
 0x240   : > { %v521_v24 = vsel %vm342_vm9, %v518_v22, %v520_v23  ;;  %525 = vst.msk [vmem:[#allocation3 + $0x88] sm:$0xff] %vm450_vm12, %v520_v23 }
 0x243   : > { %v542_v26 = vld [vmem:[#allocation3 + $0x78] sm:$0xff] }
 0x244   : > { %v754_v27 = vpack.c.bf16 %v542_v26, %v540_v25 }
 0x246   : > { %755 = vmatprep.subr.bf16.mxu1 %v754_v27 }
 0x247   : > { %757 = vmatpush1.bf16.msra.mxu1 %v756_v28  ;;  %v544_v29 = vld [vmem:[#allocation3 + $0x88] sm:$0xff] }
 0x248   : > { %571 = vmatprep.subr.mxu1 %v544_v29  ;;  %v549_v31 = vpop.permute.xlu0 %548 }
 0x24b   : > { %572 = vmatpush1.msra.mxu1 %v521_v24 }
 0x24c   : > { %726 = vmatmul.mubr.msk.f32.vlgmr.msra.gmra.mrb[0].mxu1 %vm551_vm13, %v526_v30 }
 0x31f   : > { %v621_v32 = vpop.f32.mrb[0].mxu1 }
 0x320   : > { %v622_v33 = vadd.f32 %v621_v32, %v549_v31  ;;  %v623_v34 = vpop.f32.mrb[1].mxu1 }
 0x321   : > { %v624_v35 = vadd.f32 %v623_v34, %v549_v31 }
 0x322   : > { %626 = vst [vmem:[%s230_s30] sm:$0xff] %v622_v33 }
 0x323   : > { %627 = vst.msk [vmem:[%s230_s30 + $0x8] sm:$0xff] %vm450_vm12, %v624_v35 }
 0x324   : > { %862 = shalt.err (!%p859_p7)
}
 0x325   : > { %s863_s23 = scalar_lea.hbm %s1127_s13, 256  ;;  %s867_s6 = scalar_lea.hbm %s1175_s5, 512 }
 0x326   : > { %p864_p8 = scmp.ne.s32.totalorder %s1127_s13, %s863_s23  ;;  %p868_p1 = scmp.lt.u32.totalorder %s1127_s13, %s1175_s5 }
 0x327   : > { %p869_p0 = scmp.lt.u32.totalorder %s867_s6, %s863_s23  ;;  %p871_p5 = scmp.lt.u32.totalorder %s863_s23, %s1127_s13 }
 0x328   : > { %p865_p11 = pnand %p864_p8, %p1186_p9 }
 0x329   : > { %p870_p6 = por %p869_p0, %p868_p1 }
 0x32a   : > { %p866_p13 = pneg %p865_p11 }
 0x32b   : > { %p872_p10 = por %p871_p5, %p870_p6 }
 0x32d   : > { %p873_p12 = pnand %p872_p10, %p866_p13 }
 0x32f   : > { %876 = shalt.err (!%p873_p12)
}
 0x330   : > { %762 = dma.vmem_to_hbm [thread:$0]  (%p1186_p9), %s1129_s10, 256, %s1127_s13, %s629_s22  }
 0x331 PF: > { %p774_p2 = scmp.ge.s32.totalorder %s915_s21, 2  ;;  %s655_s7 = sand.u32 1, %s903_s18  }
 0x332   : > { %p1187_p3 = scmp.ne.s32.totalorder %s1180_s29, 0  ;;  %s656_s30 = scalar_lea.sflag [#allocation6], %s655_s7 }
 0x334   : > { %p769_p4 = pnand %p774_p2, %p1187_p3 }
 0x336   : > { %898 = dma.done.wait (!%p769_p4), %s656_s30, 256  }
 0x337   : > { %900 = vsyncadd (!%p769_p4), %s656_s30, 4294967040  ;;  %p16_p7 = scmp.ge.s32.totalorder %s984_s24, 4   ;;  %s1188_s18 = smov %s907_s19 }
 0x338   : > { %s1189_s19 = smov %s911_s20  ;;  %s1190_s20 = smov %s995_s27 }
 0x339   : > { %s1191_s21 = smov %s984_s24  ;;  %18 = sbr.rel (!%p16_p7) target bundleno = 4 (0x4), region = 80 }
 0x340   :  { %661 = vsyncpa [#allocation5], 1 }
 0x341   :  { %663 = vsyncpa [#allocation5 + $0x1], 1 }
 0x342   :  { %664 = vsyncpa [#allocation6], 1 }
 0x343   :  { %666 = vsyncpa [#allocation6 + $0x1], 1 }

</bundles_post_ra>
